<compile_context>
chip_gen: v7x
topology: tpu7x:2x2x1
jax: 0.10.0
libtpu: 0.0.40
codegen_flags: <defaults>
</compile_context>

<pallas_src>
import functools
import math

import jax
import jax.numpy as jnp
from jax.experimental import pallas as pl
from jax.experimental.pallas import tpu as pltpu

_INV_SQRT2 = 1.0 / math.sqrt(2.0)
_SQRT_2_OVER_PI = math.sqrt(2.0 / math.pi)


def _cdiv(a, b):
    return -(-a // b)


def _round_up(x, m):
    return _cdiv(x, m) * m


def _gelu_f32(g, approximate):
    if approximate:
        # tanh-approx GELU: transcendental goes to the EUP slot (near-free under
        # the MXU on v6e/v7x).  Numerics differ slightly from exact erf.
        return 0.5 * g * (1.0 + jnp.tanh(_SQRT_2_OVER_PI * (g + 0.044715 * g * g * g)))
    # Exact (erf) GELU, matches F.gelu default.
    return 0.5 * g * (1.0 + jax.lax.erf(g * _INV_SQRT2))


def _ffn_kernel(x_ref, w1h_ref, w1g_ref, b1h_ref, b1g_ref, w2_ref, b2_ref,
                o_ref, acc_ref, *, approximate_gelu):
    # x_ref:   (tm, dim)          w1h_ref/w1g_ref: (dim, ti)
    # b1h_ref/b1g_ref: (1, ti)    w2_ref: (ti, dim_out_p)   b2_ref: (1, dim_out_p)
    # o_ref:   (tm, dim_out_p)    acc_ref: (tm, dim_out_p) f32 scratch
    j = pl.program_id(1)

    @pl.when(j == 0)
    def _():
        acc_ref[...] = jnp.zeros_like(acc_ref)

    x = x_ref[...]  # native dtype straight to the MXU (bf16 stays bf16)

    # GEGLU projection for this inner-dim tile: two separate dots instead of one
    # wide proj + lane slice.
    h = jnp.dot(x, w1h_ref[...], preferred_element_type=jnp.float32)
    h = h + b1h_ref[...].astype(jnp.float32)
    g = jnp.dot(x, w1g_ref[...], preferred_element_type=jnp.float32)
    g = g + b1g_ref[...].astype(jnp.float32)

    hidden = (h * _gelu_f32(g, approximate_gelu)).astype(w2_ref.dtype)

    acc_ref[...] += jnp.dot(hidden, w2_ref[...],
                            preferred_element_type=jnp.float32)

    @pl.when(j == pl.num_programs(1) - 1)
    def _():
        o_ref[...] = (acc_ref[...] + b2_ref[...].astype(jnp.float32)
                      ).astype(o_ref.dtype)


def _hardware_defaults():
    """Per-generation tile / VMEM-limit presets."""
    vmem_cap = 128 * 1024 * 1024
    try:
        vmem_cap = int(getattr(pltpu.get_tpu_info(), "vmem_capacity_bytes", vmem_cap))
    except Exception:
        pass
    if vmem_cap >= 96 * 1024 * 1024:
        # v5e / v6e class: 128 MiB physical VMEM, single TensorCore.
        return dict(tm=2048, ti=1024,
                    vmem_limit_bytes=100 * 1024 * 1024,
                    prefer_two_row_tiles=False)
    # v7x class: 64 MiB per-core VMEM, 2 TensorCores -> keep >=2 row tiles.
    return dict(tm=1024, ti=1024,
                vmem_limit_bytes=48 * 1024 * 1024,
                prefer_two_row_tiles=True)


def _choose_row_tile(M, dim, ti, dim_out_p, elt_bytes, hw):
    """cdiv-balanced row tile, capped by the VMEM budget."""
    tm_target = hw["tm"]
    if hw["prefer_two_row_tiles"] and M > tm_target:
        # Megacore balance on v7x: never fewer than 2 row tiles for large M.
        tm_target = min(tm_target, _round_up(_cdiv(M, 2), 8))

    n_row = max(1, _cdiv(M, tm_target))
    tm = min(_round_up(_cdiv(M, n_row), 8), _round_up(M, 8))

    def vmem_est(tm_):
        x_b = 2 * tm_ * dim * elt_bytes                        # double-buffered x
        w_b = 2 * (2 * dim * ti + ti * dim_out_p) * elt_bytes  # w1h + w1g + w2
        o_b = 2 * tm_ * dim_out_p * elt_bytes                  # output tile
        acc_b = tm_ * dim_out_p * 4                            # f32 accumulator
        bias_b = 2 * (2 * ti + dim_out_p) * elt_bytes
        return x_b + w_b + o_b + acc_b + bias_b

    budget = int(hw["vmem_limit_bytes"] * 0.75)
    while vmem_est(tm) > budget and tm > 256:
        tm = max(256, _round_up(tm // 2, 8))
    return tm


def make_feed_forward(w1, b1, w2, b2, *,
                      compute_dtype=None,
                      approximate_gelu=False,
                      weight_buffer_count=None):
    """One-time weight preprocessing (split + pad + optional cast), hoisted out of
    the per-call path.  Returns apply(hidden_states) -> (B, S, dim_out).

    w1: (dim, 2*inner)  b1: (2*inner,)  w2: (inner, dim_out)  b2: (dim_out,)
    """
    dim, two_inner = w1.shape
    inner = two_inner // 2
    dim_out = w2.shape[1]
    dim_out_p = _round_up(dim_out, 128)

    hw = _hardware_defaults()

    # cdiv-balanced inner tile (multiple of 128).
    inner_base = _round_up(inner, 128)
    n_inner = max(1, _cdiv(inner_base, hw["ti"]))
    ti = _round_up(_cdiv(inner_base, n_inner), 128)
    inner_p = n_inner * ti

    if compute_dtype is not None:
        w1 = w1.astype(compute_dtype)
        w2 = w2.astype(compute_dtype)
        b1 = b1.astype(compute_dtype)
        b2 = b2.astype(compute_dtype)

    # Split W1 so the kernel never lane-slices a wide intermediate; pad GEGLU
    # columns / W2 rows & cols with exact zeros (sliced off in the wrapper).
    w1_h = w1[:, :inner]
    w1_g = w1[:, inner:]
    b1_h = b1[:inner].reshape(1, inner)
    b1_g = b1[inner:].reshape(1, inner)
    if inner_p != inner:
        pad_i = inner_p - inner
        w1_h = jnp.pad(w1_h, ((0, 0), (0, pad_i)))
        w1_g = jnp.pad(w1_g, ((0, 0), (0, pad_i)))
        b1_h = jnp.pad(b1_h, ((0, 0), (0, pad_i)))
        b1_g = jnp.pad(b1_g, ((0, 0), (0, pad_i)))

    w2_p = w2
    b2_p = b2.reshape(1, dim_out)
    if inner_p != inner or dim_out_p != dim_out:
        w2_p = jnp.pad(w2, ((0, inner_p - inner), (0, dim_out_p - dim_out)))
        b2_p = jnp.pad(b2_p, ((0, 0), (0, dim_out_p - dim_out)))

    # Materialize the preprocessed weights once.
    w1_h, w1_g, b1_h, b1_g, w2_p, b2_p = jax.block_until_ready(
        (w1_h, w1_g, b1_h, b1_g, w2_p, b2_p))

    elt_bytes = jnp.dtype(w1_h.dtype).itemsize
    kernel = functools.partial(_ffn_kernel, approximate_gelu=approximate_gelu)

    # Optional deeper pipelining on the weight streams only.
    w_spec_kwargs = {}
    if weight_buffer_count is not None:
        w_spec_kwargs = dict(pipeline_mode=pl.Buffered(weight_buffer_count))

    def apply(hidden_states):
        B, S, d_in = hidden_states.shape
        assert d_in == dim, f"expected last dim {dim}, got {d_in}"
        x2d = hidden_states.reshape(B * S, dim)
        if compute_dtype is not None:
            x2d = x2d.astype(compute_dtype)
        M = B * S

        tm = _choose_row_tile(M, dim, ti, dim_out_p, elt_bytes, hw)
        M_p = _round_up(M, tm)
        if M_p != M:
            x2d = jnp.pad(x2d, ((0, M_p - M), (0, 0)))

        grid = (M_p // tm, inner_p // ti)

        out2d = pl.pallas_call(
            kernel,
            out_shape=jax.ShapeDtypeStruct((M_p, dim_out_p), hidden_states.dtype),
            grid_spec=pltpu.PrefetchScalarGridSpec(
                num_scalar_prefetch=0,
                grid=grid,
                in_specs=[
                    pl.BlockSpec((tm, dim), lambda i, j: (i, 0)),
                    pl.BlockSpec((dim, ti), lambda i, j: (0, j), **w_spec_kwargs),
                    pl.BlockSpec((dim, ti), lambda i, j: (0, j), **w_spec_kwargs),
                    pl.BlockSpec((1, ti), lambda i, j: (0, j)),
                    pl.BlockSpec((1, ti), lambda i, j: (0, j)),
                    pl.BlockSpec((ti, dim_out_p), lambda i, j: (j, 0), **w_spec_kwargs),
                    pl.BlockSpec((1, dim_out_p), lambda i, j: (0, 0)),
                ],
                out_specs=pl.BlockSpec((tm, dim_out_p), lambda i, j: (i, 0)),
                scratch_shapes=[pltpu.VMEM((tm, dim_out_p), jnp.float32)],
            ),
            compiler_params=pltpu.CompilerParams(
                dimension_semantics=("parallel", "arbitrary"),
                vmem_limit_bytes=hw["vmem_limit_bytes"],
            ),
        )(x2d, w1_h, w1_g, b1_h, b1_g, w2_p, b2_p)

        return out2d[:M, :dim_out].reshape(B, S, dim_out)

    return apply


def feed_forward(hidden_states, w1, b1, w2, b2, **kwargs):
    """Convenience wrapper: one-shot (preprocess + apply)."""
    return make_feed_forward(w1, b1, w2, b2, **kwargs)(hidden_states)


def _reference(hidden_states, w1, b1, w2, b2):
    proj = jnp.einsum("bsd,de->bse", hidden_states, w1) + b1
    inner = w2.shape[0]
    h, gate = proj[..., :inner], proj[..., inner:]
    gate_act = 0.5 * gate * (1.0 + jax.lax.erf(gate / jnp.sqrt(2.0)))
    return jnp.einsum("bse,eo->bso", h * gate_act, w2) + b2


if __name__ == "__main__":
    # Module config: dim=32, mult=4 -> inner_dim=128, dim_out=dim=32, bias=True
    B, S, dim = 2, 8, 32
    mult = 4
    inner_dim = dim * mult          # 128
    dim_out = dim                   # 32

    key = jax.random.PRNGKey(0)
    k_x, k_w1, k_b1, k_w2, k_b2 = jax.random.split(key, 5)

    x = jax.random.normal(k_x, (B, S, dim), dtype=jnp.float32)
    # Linear(dim, 2*inner_dim) — stored as (in, out) for x @ W
    w1 = jax.random.normal(k_w1, (dim, 2 * inner_dim), dtype=jnp.float32) * 0.05
    b1 = jax.random.normal(k_b1, (2 * inner_dim,), dtype=jnp.float32) * 0.05
    # Linear(inner_dim, dim_out)
    w2 = jax.random.normal(k_w2, (inner_dim, dim_out), dtype=jnp.float32) * 0.05
    b2 = jax.random.normal(k_b2, (dim_out,), dtype=jnp.float32) * 0.05

    # Weight preprocessing hoisted to init; exact erf GELU, f32 path for the test.
    ffn = make_feed_forward(w1, b1, w2, b2)
    out = jax.block_until_ready(ffn(x))

    ref = _reference(x, w1, b1, w2, b2)
    assert out.shape == (B, S, dim_out)
    assert jnp.allclose(out, ref, atol=1e-5, rtol=1e-5), "mismatch vs reference"

    print("KERNEL_OK")
</pallas_src>

<mosaic_0001>
module attributes {stable_mosaic.version = 11 : i64} {
  func.func @_ffn_kernel(%arg0: i32, %arg1: i32, %arg2: memref<16x32xf32, #tpu.memory_space<vmem>>, %arg3: memref<32x128xf32, #tpu.memory_space<vmem>>, %arg4: memref<32x128xf32, #tpu.memory_space<vmem>>, %arg5: memref<1x128xf32, #tpu.memory_space<vmem>>, %arg6: memref<1x128xf32, #tpu.memory_space<vmem>>, %arg7: memref<128x128xf32, #tpu.memory_space<vmem>>, %arg8: memref<1x128xf32, #tpu.memory_space<vmem>>, %arg9: memref<16x128xf32, #tpu.memory_space<vmem>>, %arg10: memref<16x128xf32, #tpu.memory_space<vmem>>) attributes {dimension_semantics = [#tpu.dimension_semantics<parallel>, #tpu.dimension_semantics<arbitrary>], iteration_bounds = array<i64: 1, 1>, scalar_prefetch = 0 : i64, scratch_operands = 1 : i64, tpu.core_type = #tpu.core_type<tc>, window_params = [{transform_indices = @transform_0, window_bounds = array<i64: 16, 32>}, {transform_indices = @transform_1, window_bounds = array<i64: 32, 128>}, {transform_indices = @transform_2, window_bounds = array<i64: 32, 128>}, {transform_indices = @transform_3, window_bounds = array<i64: 1, 128>}, {transform_indices = @transform_4, window_bounds = array<i64: 1, 128>}, {transform_indices = @transform_5, window_bounds = array<i64: 128, 128>}, {pipeline_mode = #tpu.pipeline_mode<synchronous>, transform_indices = @transform_6, window_bounds = array<i64: 1, 128>}, {transform_indices = @transform_7, window_bounds = array<i64: 16, 128>}]} {
    %c0_i32 = arith.constant 0 : i32
    %0 = arith.cmpi eq, %arg1, %c0_i32 : i32
    %1 = arith.extui %0 : i1 to i32
    %c0_i32_0 = arith.constant 0 : i32
    %2 = arith.cmpi ne, %1, %c0_i32_0 : i32
    scf.if %2 {
      %cst_23 = arith.constant 0.000000e+00 : f32
      %31 = vector.broadcast %cst_23 : f32 to vector<16x128xf32>
      %c0_24 = arith.constant 0 : index
      %c0_25 = arith.constant 0 : index
      %32 = vector.load %arg10[%c0_24, %c0_25] : memref<16x128xf32, #tpu.memory_space<vmem>>, vector<16x128xf32>
      tpu.vector_store %arg10[%c0_24, %c0_25], %31 {strides = array<i32>} : memref<16x128xf32, #tpu.memory_space<vmem>>, vector<16x128xf32>,
    } else {
    }
    %c0 = arith.constant 0 : index
    %c0_1 = arith.constant 0 : index
    %3 = vector.load %arg2[%c0, %c0_1] : memref<16x32xf32, #tpu.memory_space<vmem>>, vector<16x32xf32>
    %c0_2 = arith.constant 0 : index
    %c0_3 = arith.constant 0 : index
    %4 = vector.load %arg3[%c0_2, %c0_3] : memref<32x128xf32, #tpu.memory_space<vmem>>, vector<32x128xf32>
    %cst = arith.constant dense<0.000000e+00> : vector<16x128xf32>
    %5 = tpu.matmul %3, %4, %cst {dimension_numbers = #tpu.dot_dimension_numbers<[1], [0], [0], [1], [0, 0, 1, 1], [], []>} : vector<16x32xf32>, vector<32x128xf32>, vector<16x128xf32> -> vector<16x128xf32>
    %c0_4 = arith.constant 0 : index
    %c0_5 = arith.constant 0 : index
    %6 = vector.load %arg5[%c0_4, %c0_5] : memref<1x128xf32, #tpu.memory_space<vmem>>, vector<1x128xf32>
    %7 = vector.broadcast %6 : vector<1x128xf32> to vector<16x128xf32>
    %8 = arith.addf %5, %7 : vector<16x128xf32>
    %c0_6 = arith.constant 0 : index
    %c0_7 = arith.constant 0 : index
    %9 = vector.load %arg4[%c0_6, %c0_7] : memref<32x128xf32, #tpu.memory_space<vmem>>, vector<32x128xf32>
    %cst_8 = arith.constant dense<0.000000e+00> : vector<16x128xf32>
    %10 = tpu.matmul %3, %9, %cst_8 {dimension_numbers = #tpu.dot_dimension_numbers<[1], [0], [0], [1], [0, 0, 1, 1], [], []>} : vector<16x32xf32>, vector<32x128xf32>, vector<16x128xf32> -> vector<16x128xf32>
    %c0_9 = arith.constant 0 : index
    %c0_10 = arith.constant 0 : index
    %11 = vector.load %arg6[%c0_9, %c0_10] : memref<1x128xf32, #tpu.memory_space<vmem>>, vector<1x128xf32>
    %12 = vector.broadcast %11 : vector<1x128xf32> to vector<16x128xf32>
    %13 = arith.addf %10, %12 : vector<16x128xf32>
    %cst_11 = arith.constant 5.000000e-01 : f32
    %14 = vector.broadcast %cst_11 : f32 to vector<16x128xf32>
    %15 = arith.mulf %14, %13 : vector<16x128xf32>
    %cst_12 = arith.constant 0.707106769 : f32
    %16 = vector.broadcast %cst_12 : f32 to vector<16x128xf32>
    %17 = arith.mulf %13, %16 : vector<16x128xf32>
    %18 = math.erf %17 : vector<16x128xf32>
    %cst_13 = arith.constant 1.000000e+00 : f32
    %19 = vector.broadcast %cst_13 : f32 to vector<16x128xf32>
    %20 = arith.addf %19, %18 : vector<16x128xf32>
    %21 = arith.mulf %15, %20 : vector<16x128xf32>
    %22 = arith.mulf %8, %21 : vector<16x128xf32>
    %c0_14 = arith.constant 0 : index
    %c0_15 = arith.constant 0 : index
    %23 = vector.load %arg10[%c0_14, %c0_15] : memref<16x128xf32, #tpu.memory_space<vmem>>, vector<16x128xf32>
    %c0_16 = arith.constant 0 : index
    %c0_17 = arith.constant 0 : index
    %24 = vector.load %arg7[%c0_16, %c0_17] : memref<128x128xf32, #tpu.memory_space<vmem>>, vector<128x128xf32>
    %cst_18 = arith.constant dense<0.000000e+00> : vector<16x128xf32>
    %25 = tpu.matmul %22, %24, %cst_18 {dimension_numbers = #tpu.dot_dimension_numbers<[1], [0], [0], [1], [0, 0, 1, 1], [], []>} : vector<16x128xf32>, vector<128x128xf32>, vector<16x128xf32> -> vector<16x128xf32>
    %26 = arith.addf %23, %25 : vector<16x128xf32>
    %c0_19 = arith.constant 0 : index
    %c0_20 = arith.constant 0 : index
    %27 = vector.load %arg10[%c0_19, %c0_20] : memref<16x128xf32, #tpu.memory_space<vmem>>, vector<16x128xf32>
    tpu.vector_store %arg10[%c0_19, %c0_20], %26 {strides = array<i32>} : memref<16x128xf32, #tpu.memory_space<vmem>>, vector<16x128xf32>,
    %c0_i32_21 = arith.constant 0 : i32
    %28 = arith.cmpi eq, %arg1, %c0_i32_21 : i32
    %29 = arith.extui %28 : i1 to i32
    %c0_i32_22 = arith.constant 0 : i32
    %30 = arith.cmpi ne, %29, %c0_i32_22 : i32
    scf.if %30 {
      %c0_23 = arith.constant 0 : index
      %c0_24 = arith.constant 0 : index
      %31 = vector.load %arg10[%c0_23, %c0_24] : memref<16x128xf32, #tpu.memory_space<vmem>>, vector<16x128xf32>
      %c0_25 = arith.constant 0 : index
      %c0_26 = arith.constant 0 : index
      %32 = vector.load %arg8[%c0_25, %c0_26] : memref<1x128xf32, #tpu.memory_space<vmem>>, vector<1x128xf32>
      %33 = vector.broadcast %32 : vector<1x128xf32> to vector<16x128xf32>
      %34 = arith.addf %31, %33 : vector<16x128xf32>
      %c0_27 = arith.constant 0 : index
      %c0_28 = arith.constant 0 : index
      %35 = vector.load %arg9[%c0_27, %c0_28] : memref<16x128xf32, #tpu.memory_space<vmem>>, vector<16x128xf32>
      tpu.vector_store %arg9[%c0_27, %c0_28], %34 {strides = array<i32>} : memref<16x128xf32, #tpu.memory_space<vmem>>, vector<16x128xf32>,
    } else {
    }
    return
  }
  func.func @transform_0(%arg0: i32, %arg1: i32) -> (i32, i32) {
    %c0_i32 = arith.constant 0 : i32
    %c0_i32_0 = arith.constant 0 : i32
    return %arg0, %c0_i32 : i32, i32
  }
  func.func @transform_1(%arg0: i32, %arg1: i32) -> (i32, i32) {
    %c0_i32 = arith.constant 0 : i32
    %c0_i32_0 = arith.constant 0 : i32
    return %c0_i32, %arg1 : i32, i32
  }
  func.func @transform_2(%arg0: i32, %arg1: i32) -> (i32, i32) {
    %c0_i32 = arith.constant 0 : i32
    %c0_i32_0 = arith.constant 0 : i32
    return %c0_i32, %arg1 : i32, i32
  }
  func.func @transform_3(%arg0: i32, %arg1: i32) -> (i32, i32) {
    %c0_i32 = arith.constant 0 : i32
    %c0_i32_0 = arith.constant 0 : i32
    return %c0_i32, %arg1 : i32, i32
  }
  func.func @transform_4(%arg0: i32, %arg1: i32) -> (i32, i32) {
    %c0_i32 = arith.constant 0 : i32
    %c0_i32_0 = arith.constant 0 : i32
    return %c0_i32, %arg1 : i32, i32
  }
  func.func @transform_5(%arg0: i32, %arg1: i32) -> (i32, i32) {
    %c0_i32 = arith.constant 0 : i32
    %c0_i32_0 = arith.constant 0 : i32
    return %arg1, %c0_i32 : i32, i32
  }
  func.func @transform_6(%arg0: i32, %arg1: i32) -> (i32, i32) {
    %c0_i32 = arith.constant 0 : i32
    %c0_i32_0 = arith.constant 0 : i32
    %c0_i32_1 = arith.constant 0 : i32
    return %c0_i32, %c0_i32_0 : i32, i32
  }
  func.func @transform_7(%arg0: i32, %arg1: i32) -> (i32, i32) {
    %c0_i32 = arith.constant 0 : i32
    %c0_i32_0 = arith.constant 0 : i32
    return %arg0, %c0_i32 : i32, i32
  }
}

</mosaic_0001>

<bundles_post_ra>
// kernel: tpu_custom_call.1
= control target key start
LH: loop header
LB: loop body
LE: loop exit
PB: predicated region body
PF: predicated region fallthrough
CT: control target
= control target key end

     0   :  { %12 = vsyncpa [#allocation4], 0  ;;  %s970_s0 = inlined_call_operand.hbm [shape: f32[16,32], index: 0, kind: input, shape index: {}]   ;;  %s971_s1 = inlined_call_operand.hbm [shape: f32[32,128], index: 1, kind: input, shape index: {}]   ;;  %s972_s2 = inlined_call_operand.hbm [shape: f32[32,128], index: 2, kind: input, shape index: {}]   ;;  %s973_s3 = inlined_call_operand.hbm [shape: f32[1,128], index: 3, kind: input, shape index: {}]   ;;  %s974_s4 = inlined_call_operand.hbm [shape: f32[1,128], index: 4, kind: input, shape index: {}]   ;;  %s975_s5 = inlined_call_operand.hbm [shape: f32[128,128], index: 5, kind: input, shape index: {}]   ;;  %s976_s6 = inlined_call_operand.hbm [shape: f32[1,128], index: 6, kind: input, shape index: {}]   ;;  %s977_s7 = inlined_call_operand.hbm [shape: f32[16,128], index: 7, kind: output, shape index: {}]  }
   0x1   :  { %13 = vsyncpa [#allocation7], 0 }
   0x2   :  { %14 = vsyncpa [#allocation10], 0 }
   0x3   :  { %15 = vsyncpa [#allocation13], 0 }
   0x4   :  { %16 = vsyncpa [#allocation5], 0  ;;  %s790_s24 = smov [#allocation6]   ;;  %s791_s26 = smov [#allocation9]  }
   0x5   :  { %s34_s25 = sshll.u32 %s790_s24, 4  ;;  %s59_s27 = sshll.u32 %s791_s26, 4  ;;  %s35_s25 = int_to_ptr.vmem [resolvable:$true] %s34_s25  ;;  %s840_s27 = int_to_ptr.vmem [resolvable:$true] %s59_s27 }
   0x6   :  { %s604_s30 = scalar_lea.hbm %s971_s1, 512 }
   0x7   :  { %p605_p0 = scmp.ne.s32.totalorder %s971_s1, %s604_s30  ;;  %p608_p1 = scmp.lt.u32.totalorder %s604_s30, %s971_s1 }
   0x9   :  { %p610_p2 = pnand %p608_p1, %p605_p0 }
   0xb   :  { %613 = shalt.err (!%p610_p2)
}
   0xc   :  { %s614_s12 = scalar_lea.vmem %s35_s25, 512  ;;  %p619_p4 = scmp.lt.s32.totalorder %s35_s25, %s35_s25 }
   0xd   :  { %p615_p3 = scmp.ne.s32.totalorder %s35_s25, %s614_s12  ;;  %p620_p5 = scmp.lt.s32.totalorder %s614_s12, %s614_s12 }
   0xf   :  { %p621_p6 = por %p620_p5, %p619_p4 }
  0x11   :  { %p622_p7 = pnand %p621_p6, %p615_p3 }
  0x13   :  { %625 = shalt.err (!%p622_p7)
}
  0x14   :  { %s792_s13 = smov 128   ;;  %s793_s14 = smov 8  }
  0x15   :  { %40 = dma.hbm_to_vmem [thread:$0]  %s971_s1, 512, %s35_s25, [#allocation7], %s792_s13, %s792_s13, %s793_s14  }
  0x16   :  { %s626_s19 = scalar_lea.hbm %s973_s3, 16 }
  0x17   :  { %p627_p8 = scmp.ne.s32.totalorder %s973_s3, %s626_s19  ;;  %p630_p9 = scmp.lt.u32.totalorder %s626_s19, %s973_s3 }
  0x19   :  { %p632_p10 = pnand %p630_p9, %p627_p8 }
  0x1b   :  { %635 = shalt.err (!%p632_p10)
}
  0x1c   :  { %s636_s24 = scalar_lea.vmem %s840_s27, 16  ;;  %s640_s1 = scalar_lea.vmem %s840_s27, 32 }
  0x1d   :  { %p637_p11 = scmp.ne.s32.totalorder %s840_s27, %s636_s24  ;;  %p641_p12 = scmp.lt.s32.totalorder %s840_s27, %s840_s27 }
  0x1e   :  { %p642_p13 = scmp.lt.s32.totalorder %s640_s1, %s636_s24 }
  0x20   :  { %p643_p0 = por %p642_p13, %p641_p12 }
  0x22   :  { %p644_p1 = pnand %p643_p0, %p637_p11 }
  0x24   :  { %647 = shalt.err (!%p644_p1)
}
  0x25   :  { %62 = dma.hbm_to_vmem [thread:$0]  %s973_s3, 16, %s840_s27, [#allocation10]  }
  0x26   :  { %s794_s28 = smov [#allocation12]   ;;  %s795_s30 = smov [#allocation3]  }
  0x27   :  { %s78_s29 = sshll.u32 %s794_s28, 4  ;;  %s22_s8 = sshll.u32 %s795_s30, 4  ;;  %s79_s29 = int_to_ptr.vmem [resolvable:$true] %s78_s29  ;;  %s875_s8 = int_to_ptr.vmem [resolvable:$true] %s22_s8 }
  0x28   :  { %s648_s11 = scalar_lea.hbm %s975_s5, 2048 }
  0x29   :  { %p649_p2 = scmp.ne.s32.totalorder %s975_s5, %s648_s11  ;;  %p652_p3 = scmp.lt.u32.totalorder %s648_s11, %s975_s5 }
  0x2b   :  { %p654_p4 = pnand %p652_p3, %p649_p2 }
  0x2d   :  { %657 = shalt.err (!%p654_p4)
}
  0x2e   :  { %s658_s3 = scalar_lea.vmem %s79_s29, 2048  ;;  %p663_p6 = scmp.lt.s32.totalorder %s79_s29, %s79_s29 }
  0x2f   :  { %p659_p5 = scmp.ne.s32.totalorder %s79_s29, %s658_s3  ;;  %p664_p7 = scmp.lt.s32.totalorder %s658_s3, %s658_s3 }
  0x31   :  { %p665_p8 = por %p664_p7, %p663_p6 }
  0x33   :  { %p666_p9 = pnand %p665_p8, %p659_p5 }
  0x35   :  { %669 = shalt.err (!%p666_p9)
}
  0x36   :  { %84 = dma.hbm_to_vmem [thread:$0]  %s975_s5, 2048, %s79_s29, [#allocation13], %s792_s13, %s792_s13, %s793_s14  }
  0x37   :  { %s670_s21 = scalar_lea.hbm %s970_s0, 256 }
  0x38   :  { %p671_p10 = scmp.ne.s32.totalorder %s970_s0, %s670_s21  ;;  %p674_p11 = scmp.lt.u32.totalorder %s670_s21, %s970_s0 }
  0x3a   :  { %p676_p12 = pnand %p674_p11, %p671_p10 }
  0x3c   :  { %679 = shalt.err (!%p676_p12)
}
  0x3d   :  { %s680_s25 = scalar_lea.vmem %s875_s8, 256  ;;  %p685_p0 = scmp.lt.s32.totalorder %s875_s8, %s875_s8 }
  0x3e   :  { %p681_p13 = scmp.ne.s32.totalorder %s875_s8, %s680_s25  ;;  %p686_p1 = scmp.lt.s32.totalorder %s680_s25, %s680_s25 }
  0x40   :  { %p687_p2 = por %p686_p1, %p685_p0 }
  0x42   :  { %p688_p3 = pnand %p687_p2, %p681_p13 }
  0x44   :  { %691 = shalt.err (!%p688_p3)
}
  0x45   :  { %28 = dma.hbm_to_vmem [thread:$0]  %s970_s0, 256, %s875_s8, [#allocation4], %s792_s13, %s792_s13, %s793_s14  }
  0x46   :  { %s796_s28 = smov [#allocation8]   ;;  %s797_s30 = smov [#allocation11]  }
  0x47   :  { %s46_s29 = sshll.u32 %s796_s28, 4  ;;  %s69_s9 = sshll.u32 %s797_s30, 4  ;;  %s47_s29 = int_to_ptr.vmem [resolvable:$true] %s46_s29  ;;  %s70_s9 = int_to_ptr.vmem [resolvable:$true] %s69_s9 }
  0x48   :  { %s692_s12 = scalar_lea.hbm %s972_s2, 512 }
  0x49   :  { %p693_p4 = scmp.ne.s32.totalorder %s972_s2, %s692_s12  ;;  %p696_p5 = scmp.lt.u32.totalorder %s692_s12, %s972_s2 }
  0x4b   :  { %p698_p6 = pnand %p696_p5, %p693_p4 }
  0x4d   :  { %701 = shalt.err (!%p698_p6)
}
  0x4e   :  { %s702_s0 = scalar_lea.vmem %s47_s29, 512  ;;  %p707_p8 = scmp.lt.s32.totalorder %s47_s29, %s47_s29 }
  0x4f   :  { %p703_p7 = scmp.ne.s32.totalorder %s47_s29, %s702_s0  ;;  %p708_p9 = scmp.lt.s32.totalorder %s702_s0, %s702_s0 }
  0x51   :  { %p709_p10 = por %p708_p9, %p707_p8 }
  0x53   :  { %p710_p11 = pnand %p709_p10, %p703_p7 }
  0x55   :  { %713 = shalt.err (!%p710_p11)
}
  0x56   :  { %52 = dma.hbm_to_vmem [thread:$0]  %s972_s2, 512, %s47_s29, [#allocation7], %s792_s13, %s792_s13, %s793_s14  }
  0x57   :  { %s714_s20 = scalar_lea.hbm %s974_s4, 16 }
  0x58   :  { %p715_p12 = scmp.ne.s32.totalorder %s974_s4, %s714_s20  ;;  %p718_p13 = scmp.lt.u32.totalorder %s714_s20, %s974_s4 }
  0x5a   :  { %p720_p0 = pnand %p718_p13, %p715_p12 }
  0x5c   :  { %723 = shalt.err (!%p720_p0)
}
  0x5d   :  { %s724_s1 = scalar_lea.vmem %s70_s9, 16  ;;  %s728_s25 = scalar_lea.vmem %s70_s9, 32 }
  0x5e   :  { %p725_p1 = scmp.ne.s32.totalorder %s70_s9, %s724_s1  ;;  %p729_p2 = scmp.lt.s32.totalorder %s70_s9, %s70_s9 }
  0x5f   :  { %p730_p3 = scmp.lt.s32.totalorder %s728_s25, %s724_s1 }
  0x61   :  { %p731_p4 = por %p730_p3, %p729_p2 }
  0x63   :  { %p732_p5 = pnand %p731_p4, %p725_p1 }
  0x65   :  { %735 = shalt.err (!%p732_p5)
}
  0x66   :  { %72 = dma.hbm_to_vmem [thread:$0]  %s974_s4, 16, %s70_s9, [#allocation10]  }
  0x67   :  { %s798_s26 = smov [#allocation14]   ;;  %s736_s10 = scalar_lea.hbm %s976_s6, 16 }
  0x68   :  { %s91_s28 = sshll.u32 %s798_s26, 4  ;;  %p737_p6 = scmp.ne.s32.totalorder %s976_s6, %s736_s10  ;;  %s92_s28 = int_to_ptr.vmem [resolvable:$true] %s91_s28 }
  0x69   :  { %p740_p7 = scmp.lt.u32.totalorder %s736_s10, %s976_s6 }
  0x6b   :  { %p742_p8 = pnand %p740_p7, %p737_p6 }
  0x6d   :  { %745 = shalt.err (!%p742_p8)
}
  0x6e   :  { %s746_s17 = scalar_lea.vmem %s92_s28, 16  ;;  %s750_s4 = scalar_lea.vmem %s92_s28, 32 }
  0x6f   :  { %p747_p9 = scmp.ne.s32.totalorder %s92_s28, %s746_s17  ;;  %p751_p10 = scmp.lt.s32.totalorder %s92_s28, %s92_s28 }
  0x70   :  { %p752_p11 = scmp.lt.s32.totalorder %s750_s4, %s746_s17 }
  0x72   :  { %p753_p12 = por %p752_p11, %p751_p10 }
  0x74   :  { %p754_p13 = pnand %p753_p12, %p747_p9 }
  0x76   :  { %757 = shalt.err (!%p754_p13)
}
  0x77   :  { %94 = dma.hbm_to_vmem [thread:$0]  %s976_s6, 16, %s92_s28, [#allocation13]  }
  0x78   :  { %780 = dma.done.wait [#allocation4], 256  }
  0x79   :  { %781 = vsyncadd [#allocation4], 4294967040 }
  0x7a   :  { %782 = dma.done.wait [#allocation7], 1024  }
  0x7b   :  { %783 = vsyncadd [#allocation7], 4294966272 }
  0x7c   :  { %784 = dma.done.wait [#allocation10], 32  }
  0x7d   :  { %785 = vsyncadd [#allocation10], 4294967264 }
  0x7e   :  { %786 = dma.done.wait [#allocation13], 2064  }
  0x7f   :  { %787 = vsyncadd [#allocation13], 4294965232  ;;  %vm135_vm0 = vcmask 261120   ;;  %v124_v0 = vld [vmem:[#allocation6] sm:$0xff]  ;;  %v125_v1 = vld [vmem:[#allocation6 + $0x8] sm:$0xff]  ;;  %s799_s6 = smov [#allocation15]  }
  0x80   :  { %v126_v2 = vld [vmem:[#allocation6 + $0x10] sm:$0xff]  ;;  %v542_v3 = vpack.c.bf16 %v125_v1, %v124_v0  ;;  %v127_v4 = vld [vmem:[#allocation6 + $0x18] sm:$0xff]  ;;  %v217_v7 = vld [vmem:[#allocation8] sm:$0xff]  ;;  %s433_s0 = sshll.u32 %s799_s6, 4  ;;  %s434_s0 = int_to_ptr.vmem [resolvable:$true] %s433_s0 }
  0x81   :  { %v122_v5 = vld [vmem:[#allocation3] sm:$0xff]  ;;  %v546_v6 = vpack.c.bf16 %v127_v4, %v126_v2  ;;  %v218_v8 = vld [vmem:[#allocation8 + $0x8] sm:$0xff]  ;;  %v220_v11 = vld [vmem:[#allocation8 + $0x18] sm:$0xff]  ;;  %s758_s8 = scalar_lea.vmem %s434_s0, 256  ;;  %p763_p1 = scmp.lt.s32.totalorder %s434_s0, %s434_s0 }
  0x82   :  { %493 = vmatprep.mubr.msk.f32.mxu1 %vm135_vm0, %v122_v5  ;;  %543 = vmatprep.subr.bf16.mxu1 %v542_v3  ;;  %v550_v9 = vpack.c.bf16 %v218_v8, %v217_v7  ;;  %v219_v10 = vld [vmem:[#allocation8 + $0x10] sm:$0xff]  ;;  %v123_v12 = vld [vmem:[#allocation3 + $0x8] sm:$0xff]  ;;  %v317_v14 = vld [vmem:[#allocation12] sm:$0xff]  ;;  %p759_p0 = scmp.ne.s32.totalorder %s434_s0, %s758_s8  ;;  %p764_p2 = scmp.lt.s32.totalorder %s758_s8, %s758_s8 }
  0x83   :  { %545 = vmatpush3.bf16.msra.mxu1 %v542_v3  ;;  %v554_v13 = vpack.c.bf16 %v220_v11, %v219_v10  ;;  %v318_v15 = vld [vmem:[#allocation12 + $0x8] sm:$0xff]  ;;  %v319_v17 = vld [vmem:[#allocation12 + $0x10] sm:$0xff]  ;;  %v320_v18 = vld [vmem:[#allocation12 + $0x18] sm:$0xff] }
  0x84   :  { %547 = vmatprep.subr.bf16.mxu1 %v546_v6  ;;  %v558_v16 = vpack.c.bf16 %v318_v15, %v317_v14  ;;  %v562_v19 = vpack.c.bf16 %v320_v18, %v319_v17  ;;  %v321_v20 = vld [vmem:[#allocation12 + $0x20] sm:$0xff]  ;;  %v322_v21 = vld [vmem:[#allocation12 + $0x28] sm:$0xff]  ;;  %v323_v23 = vld [vmem:[#allocation12 + $0x30] sm:$0xff]  ;;  %p765_p3 = por %p764_p2, %p763_p1 }
  0x85   :  { %v566_v22 = vpack.c.bf16 %v322_v21, %v321_v20  ;;  %v324_v24 = vld [vmem:[#allocation12 + $0x38] sm:$0xff]  ;;  %v325_v26 = vld [vmem:[#allocation12 + $0x40] sm:$0xff]  ;;  %v326_v27 = vld [vmem:[#allocation12 + $0x48] sm:$0xff] }
  0x86   :  { %559 = vmatprep.subr.bf16.mxu0 %v558_v16  ;;  %v570_v25 = vpack.c.bf16 %v324_v24, %v323_v23  ;;  %v574_v28 = vpack.c.bf16 %v326_v27, %v325_v26  ;;  %v327_v29 = vld [vmem:[#allocation12 + $0x50] sm:$0xff]  ;;  %v328_v30 = vld [vmem:[#allocation12 + $0x58] sm:$0xff]  ;;  %v329_v32 = vld [vmem:[#allocation12 + $0x60] sm:$0xff]  ;;  %p766_p4 = pnand %p765_p3, %p759_p0 }
  0x87   :  { %549 = vmatpush3.bf16.msra.mxu1 %v546_v6  ;;  %561 = vmatpush3.bf16.msra.mxu0 %v558_v16  ;;  %v578_v31 = vpack.c.bf16 %v328_v30, %v327_v29  ;;  %v330_v33 = vld [vmem:[#allocation12 + $0x68] sm:$0xff]  ;;  %v331_v35 = vld [vmem:[#allocation12 + $0x70] sm:$0xff]  ;;  %v332_v36 = vld [vmem:[#allocation12 + $0x78] sm:$0xff] }
  0x88   :  { %551 = vmatprep.subr.bf16.mxu1 %v550_v9  ;;  %563 = vmatprep.subr.bf16.mxu0 %v562_v19  ;;  %v582_v34 = vpack.c.bf16 %v330_v33, %v329_v32  ;;  %v586_v37 = vpack.c.bf16 %v332_v36, %v331_v35  ;;  %v451_v40 = vld [vmem:[#allocation11] ss:$0 sm:$0xff]  ;;  %v448_v48 = vld [vmem:[#allocation9] ss:$0 sm:$0xff]  ;;  %v454_v60 = vld [vmem:[#allocation14] ss:$0 sm:$0xff] }
  0x8a   :  { %494 = vmatmul.mubr.msk.f32.vlgmr.msra.gmra.mrb[0].mxu1 %vm135_vm0, %v123_v12 }
  0x8b   :  { %553 = vmatpush3.bf16.msra.mxu1 %v550_v9  ;;  %504 = vmatprep.mubr.msk.f32.mxu1 %vm135_vm0, %v122_v5 }
  0x8c   :  { %555 = vmatprep.subr.bf16.mxu1 %v554_v13  ;;  %565 = vmatpush3.bf16.msra.mxu0 %v562_v19 }
  0x8d   :  { %567 = vmatprep.subr.bf16.mxu0 %v566_v22 }
  0x8f   :  { %557 = vmatpush3.bf16.msra.mxu1 %v554_v13 }
  0x90   :  { %569 = vmatpush3.bf16.msra.mxu0 %v566_v22 }
  0x91   :  { %571 = vmatprep.subr.bf16.mxu0 %v570_v25 }
  0x92   :  { %505 = vmatmul.mubr.msk.f32.vlgmr.msra.gmra.mrb[2].mxu1 %vm135_vm0, %v123_v12 }
  0x94   :  { %573 = vmatpush3.bf16.msra.mxu0 %v570_v25 }
  0x95   :  { %575 = vmatprep.subr.bf16.mxu0 %v574_v28 }
  0x98   :  { %577 = vmatpush3.bf16.msra.mxu0 %v574_v28 }
  0x99   :  { %579 = vmatprep.subr.bf16.mxu0 %v578_v31 }
  0x9c   :  { %581 = vmatpush3.bf16.msra.mxu0 %v578_v31 }
  0x9d   :  { %583 = vmatprep.subr.bf16.mxu0 %v582_v34 }
  0xa0   :  { %585 = vmatpush3.bf16.msra.mxu0 %v582_v34 }
  0xa1   :  { %587 = vmatprep.subr.bf16.mxu0 %v586_v37 }
  0xa4   :  { %589 = vmatpush3.bf16.msra.mxu0 %v586_v37 }
 0x15d   :  { %v495_v38 = vpop.f32.mrb[0].mxu1 }
 0x15e   :  { %v208_v39 = vpop.f32.mrb[1].mxu1  ;;  %v214_v54 = vadd.f32 %v495_v38, %v448_v48 }
 0x15f   :  { %v209_v56 = vadd.f32 %v448_v48, %v208_v39 }
 0x165   :  { %v506_v41 = vpop.f32.mrb[2].mxu1 }
 0x166   :  { %v300_v42 = vadd.f32 %v506_v41, %v451_v40  ;;  %v294_v43 = vpop.f32.mrb[3].mxu1 }
 0x167   :  { %v295_v44 = vadd.f32 %v451_v40, %v294_v43 }
 0x168   :  { %v306_v45 = vmul.f32 0.70710677, %v300_v42  ;;  %v304_v50 = vmul.f32 0.5, %v300_v42 }
 0x169   :  { %v305_v46 = vmul.f32 0.70710677, %v295_v44  ;;  %v303_v52 = vmul.f32 0.5, %v295_v44 }
 0x16a   :  { %600 = verf.f32 %v306_v45 }
 0x16b   :  { %602 = verf.f32 %v305_v46 }
 0x174   :  { %v601_v47 = vpop.eup %600 }
 0x175   :  { %v603_v49 = vpop.eup %602  ;;  %v310_v51 = vadd.f32 1.0, %v601_v47 }
 0x176   :  { %v309_v53 = vadd.f32 1.0, %v603_v49 }
 0x177   :  { %v312_v55 = vmul.f32 %v310_v51, %v304_v50 }
 0x178   :  { %v311_v57 = vmul.f32 %v309_v53, %v303_v52 }
 0x179   :  { %v314_v58 = vmul.f32 %v312_v55, %v214_v54 }
 0x17a   :  { %v313_v59 = vmul.f32 %v311_v57, %v209_v56 }
 0x17c   :  { %539 = vmatprep.mubr.f32.mxu0 %v313_v59 }
 0x17d   :  { %540 = vmatmul.mubr.f32.vlgmr.msra.gmra.mrb[0].mxu0 %v314_v58 }
 0x250   :  { %v541_v61 = vpop.f32.mrb[0].mxu0 }
 0x251   :  { %v425_v62 = vadd.f32 %v541_v61, %v454_v60  ;;  %v399_v63 = vpop.f32.mrb[1].mxu0 }
 0x252   :  { %v424_v0 = vadd.f32 %v454_v60, %v399_v63 }
 0x253   :  { %427 = vst [vmem:[#allocation15 + $0x8] sm:$0xff] %v425_v62 }
 0x254   :  { %426 = vst [vmem:[#allocation15] sm:$0xff] %v424_v0 }
 0x255   :  { %769 = shalt.err (!%p766_p4)
}
 0x256   :  { %s770_s19 = scalar_lea.hbm %s977_s7, 256 }
 0x257   :  { %p771_p5 = scmp.ne.s32.totalorder %s977_s7, %s770_s19  ;;  %p774_p6 = scmp.lt.u32.totalorder %s770_s19, %s977_s7 }
 0x259   :  { %p776_p7 = pnand %p774_p6, %p771_p5 }
 0x25b   :  { %779 = shalt.err (!%p776_p7)
}
 0x25c   :  { %439 = dma.vmem_to_hbm [thread:$0]  %s434_s0, 256, %s977_s7, [#allocation5], %s792_s13, %s792_s13, %s793_s14  }
 0x25d   :  { %788 = dma.done.wait [#allocation5], 256  }
 0x25e   :  { %789 = vsyncadd [#allocation5], 4294967040 }
 0x25f   :  { %443 = vsyncpa [#allocation4], 1 }
 0x260   :  { %444 = vsyncpa [#allocation7], 1 }
 0x261   :  { %445 = vsyncpa [#allocation10], 1 }
 0x262   :  { %446 = vsyncpa [#allocation13], 1 }
 0x263   :  { %447 = vsyncpa [#allocation5], 1 }

</bundles_post_ra>
